<compile_context>
chip_gen: v7x
topology: tpu7x:2x2x1
jax: 0.10.0
libtpu: 0.0.40
codegen_flags: <defaults>
</compile_context>

<pallas_src>
import jax
import jax.numpy as jnp
from jax.experimental import pallas as pl
from jax.experimental.pallas import tpu as pltpu


# --------------------------------------------------------------------------
# Kernel 1: pooled = tanh(x @ W1 + b1), K-reduction tiled over the weight.
# --------------------------------------------------------------------------
def dense_tanh_kernel(x_ref, w_ref, b_ref, o_ref, acc_ref):
    k = pl.program_id(1)

    @pl.when(k == 0)
    def _init():
        acc_ref[...] = jnp.zeros_like(acc_ref)

    # MXU matmul, f32 accumulation.
    acc_ref[...] += jnp.dot(
        x_ref[...], w_ref[...], preferred_element_type=jnp.float32
    )

    # Bias + tanh only after the full K reduction (EUP/VPU epilogue).
    @pl.when(k == pl.num_programs(1) - 1)
    def _epilogue():
        y = acc_ref[...] + b_ref[...].astype(jnp.float32)
        o_ref[...] = jnp.tanh(y).astype(o_ref.dtype)


# --------------------------------------------------------------------------
# Kernel 2: logits = pooled @ W2 + b2 (tiny weight, single block).
# --------------------------------------------------------------------------
def out_proj_kernel(x_ref, w_ref, b_ref, o_ref):
    y = jnp.dot(x_ref[...], w_ref[...], preferred_element_type=jnp.float32)
    o_ref[...] = (y + b_ref[...].astype(jnp.float32)).astype(o_ref.dtype)


# --------------------------------------------------------------------------
# Wrapper
# --------------------------------------------------------------------------
def summaryformer_classification_head(
    features,          # (B, S, H)
    w_dense, b_dense,  # (H, H) PyTorch (out, in), (H,)
    w_out, b_out,      # (L, H) PyTorch (out, in), (L,)
    *,
    tn=512,            # output-feature tile of the dense layer (lane dim)
    tk=512,            # reduction tile of the dense layer
    vmem_limit_bytes=None,
):
    B, S, H = features.shape
    L = w_out.shape[0]
    dtype = features.dtype

    # (1) First-token slice in the wrapper: only B*H activations reach HBM->VMEM.
    x0 = features[:, 0, :]                                   # (B, H)
    # dropout: identity at inference.

    # (2) Pad B up to a sublane multiple so the single MXU M-tile is well formed.
    B_pad = max(8, ((B + 7) // 8) * 8)
    if B_pad != B:
        x0 = jnp.pad(x0, ((0, B_pad - B), (0, 0)))

    # (3) Pre-transpose the PyTorch (out, in) weights -> kernel computes x @ W.
    w1 = jnp.transpose(w_dense)                               # (H_in, H_out)
    w2 = jnp.transpose(w_out)                                 # (H, L)
    b1 = b_dense.reshape(1, H)
    b2 = b_out.reshape(1, L)

    # (4) Clamp tiles to the problem size; (8,128)-legal by construction.
    tn = min(tn, H)
    tk = min(tk, H)
    assert H % tn == 0 and H % tk == 0, "hidden_size must be divisible by tn/tk"
    grid = (H // tn, H // tk)   # (N tiles, K tiles); K is the fastest/last axis.

    compiler_params = pltpu.CompilerParams(
        dimension_semantics=("parallel", "arbitrary"),
        vmem_limit_bytes=vmem_limit_bytes,
    )

    pooled = pl.pallas_call(
        dense_tanh_kernel,
        out_shape=jax.ShapeDtypeStruct((B_pad, H), dtype),
        grid_spec=pltpu.PrefetchScalarGridSpec(
            num_scalar_prefetch=0,
            grid=grid,
            in_specs=[
                pl.BlockSpec((B_pad, tk), lambda n, k: (0, k)),  # activations
                pl.BlockSpec((tk, tn),    lambda n, k: (k, n)),  # streamed weight
                pl.BlockSpec((1, tn),     lambda n, k: (0, n)),  # bias
            ],
            out_specs=pl.BlockSpec((B_pad, tn), lambda n, k: (0, n)),
            scratch_shapes=[pltpu.VMEM((B_pad, tn), jnp.float32)],
        ),
        compiler_params=compiler_params,
    )(x0, w1, b1)

    logits = pl.pallas_call(
        out_proj_kernel,
        out_shape=jax.ShapeDtypeStruct((B_pad, L), dtype),
        grid=(1,),
        in_specs=[
            pl.BlockSpec((B_pad, H), lambda i: (0, 0)),
            pl.BlockSpec((H, L),     lambda i: (0, 0)),
            pl.BlockSpec((1, L),     lambda i: (0, 0)),
        ],
        out_specs=pl.BlockSpec((B_pad, L), lambda i: (0, 0)),
    )(pooled, w2, b2)

    return logits[:B]


# --------------------------------------------------------------------------
# Self-test
# --------------------------------------------------------------------------
if __name__ == "__main__":
    key = jax.random.PRNGKey(0)
    B, S, H, L = 2, 8, 256, 4
    k1, k2, k3, k4, k5 = jax.random.split(key, 5)

    features = jax.random.normal(k1, (B, S, H), dtype=jnp.float32)
    w_dense = jax.random.normal(k2, (H, H), dtype=jnp.float32) / jnp.sqrt(H)
    b_dense = jax.random.normal(k3, (H,), dtype=jnp.float32) * 0.1
    w_out = jax.random.normal(k4, (L, H), dtype=jnp.float32) / jnp.sqrt(H)
    b_out = jax.random.normal(k5, (L,), dtype=jnp.float32) * 0.1

    # small tiles so the (N, K) grid and the K-accumulator path are exercised
    logits = summaryformer_classification_head(
        features, w_dense, b_dense, w_out, b_out, tn=128, tk=128
    )
    logits = jax.block_until_ready(logits)

    # reference (dropout is identity in eval mode)
    x0 = features[:, 0, :]
    ref = jnp.tanh(x0 @ w_dense.T + b_dense) @ w_out.T + b_out

    assert logits.shape == (B, L), logits.shape
    # loose tolerance: MXU matmul precision modes may differ from XLA's default
    assert jnp.allclose(logits, ref, atol=5e-2, rtol=5e-2), float(
        jnp.max(jnp.abs(logits - ref))
    )
    print("KERNEL_OK")
</pallas_src>

<mosaic_0001>
module attributes {stable_mosaic.version = 11 : i64} {
  func.func @dense_tanh_kernel(%arg0: i32, %arg1: i32, %arg2: memref<8x128xf32, #tpu.memory_space<vmem>>, %arg3: memref<128x128xf32, #tpu.memory_space<vmem>>, %arg4: memref<1x128xf32, #tpu.memory_space<vmem>>, %arg5: memref<8x128xf32, #tpu.memory_space<vmem>>, %arg6: memref<8x128xf32, #tpu.memory_space<vmem>>) attributes {dimension_semantics = [#tpu.dimension_semantics<parallel>, #tpu.dimension_semantics<arbitrary>], iteration_bounds = array<i64: 2, 2>, scalar_prefetch = 0 : i64, scratch_operands = 1 : i64, tpu.core_type = #tpu.core_type<tc>, window_params = [{transform_indices = @transform_0, window_bounds = array<i64: 8, 128>}, {transform_indices = @transform_1, window_bounds = array<i64: 128, 128>}, {transform_indices = @transform_2, window_bounds = array<i64: 1, 128>}, {transform_indices = @transform_3, window_bounds = array<i64: 8, 128>}]} {
    %c0_i32 = arith.constant 0 : i32
    %0 = arith.cmpi eq, %arg1, %c0_i32 : i32
    %1 = arith.extui %0 : i1 to i32
    %c0_i32_0 = arith.constant 0 : i32
    %2 = arith.cmpi ne, %1, %c0_i32_0 : i32
    scf.if %2 {
      %cst_9 = arith.constant 0.000000e+00 : f32
      %12 = vector.broadcast %cst_9 : f32 to vector<8x128xf32>
      %c0_10 = arith.constant 0 : index
      %c0_11 = arith.constant 0 : index
      %13 = vector.load %arg6[%c0_10, %c0_11] : memref<8x128xf32, #tpu.memory_space<vmem>>, vector<8x128xf32>
      tpu.vector_store %arg6[%c0_10, %c0_11], %12 {strides = array<i32>} : memref<8x128xf32, #tpu.memory_space<vmem>>, vector<8x128xf32>,
    } else {
    }
    %c0 = arith.constant 0 : index
    %c0_1 = arith.constant 0 : index
    %3 = vector.load %arg6[%c0, %c0_1] : memref<8x128xf32, #tpu.memory_space<vmem>>, vector<8x128xf32>
    %c0_2 = arith.constant 0 : index
    %c0_3 = arith.constant 0 : index
    %4 = vector.load %arg2[%c0_2, %c0_3] : memref<8x128xf32, #tpu.memory_space<vmem>>, vector<8x128xf32>
    %c0_4 = arith.constant 0 : index
    %c0_5 = arith.constant 0 : index
    %5 = vector.load %arg3[%c0_4, %c0_5] : memref<128x128xf32, #tpu.memory_space<vmem>>, vector<128x128xf32>
    %cst = arith.constant dense<0.000000e+00> : vector<8x128xf32>
    %6 = tpu.matmul %4, %5, %cst {dimension_numbers = #tpu.dot_dimension_numbers<[1], [0], [0], [1], [0, 0, 1, 1], [], []>} : vector<8x128xf32>, vector<128x128xf32>, vector<8x128xf32> -> vector<8x128xf32>
    %7 = arith.addf %3, %6 : vector<8x128xf32>
    %c0_6 = arith.constant 0 : index
    %c0_7 = arith.constant 0 : index
    %8 = vector.load %arg6[%c0_6, %c0_7] : memref<8x128xf32, #tpu.memory_space<vmem>>, vector<8x128xf32>
    tpu.vector_store %arg6[%c0_6, %c0_7], %7 {strides = array<i32>} : memref<8x128xf32, #tpu.memory_space<vmem>>, vector<8x128xf32>,
    %c1_i32 = arith.constant 1 : i32
    %9 = arith.cmpi eq, %arg1, %c1_i32 : i32
    %10 = arith.extui %9 : i1 to i32
    %c0_i32_8 = arith.constant 0 : i32
    %11 = arith.cmpi ne, %10, %c0_i32_8 : i32
    scf.if %11 {
      %c0_9 = arith.constant 0 : index
      %c0_10 = arith.constant 0 : index
      %12 = vector.load %arg6[%c0_9, %c0_10] : memref<8x128xf32, #tpu.memory_space<vmem>>, vector<8x128xf32>
      %c0_11 = arith.constant 0 : index
      %c0_12 = arith.constant 0 : index
      %13 = vector.load %arg4[%c0_11, %c0_12] : memref<1x128xf32, #tpu.memory_space<vmem>>, vector<1x128xf32>
      %14 = vector.broadcast %13 : vector<1x128xf32> to vector<8x128xf32>
      %15 = arith.addf %12, %14 : vector<8x128xf32>
      %16 = math.tanh %15 : vector<8x128xf32>
      %c0_13 = arith.constant 0 : index
      %c0_14 = arith.constant 0 : index
      %17 = vector.load %arg5[%c0_13, %c0_14] : memref<8x128xf32, #tpu.memory_space<vmem>>, vector<8x128xf32>
      tpu.vector_store %arg5[%c0_13, %c0_14], %16 {strides = array<i32>} : memref<8x128xf32, #tpu.memory_space<vmem>>, vector<8x128xf32>,
    } else {
    }
    return
  }
  func.func @transform_0(%arg0: i32, %arg1: i32) -> (i32, i32) {
    %c0_i32 = arith.constant 0 : i32
    %c0_i32_0 = arith.constant 0 : i32
    return %c0_i32, %arg1 : i32, i32
  }
  func.func @transform_1(%arg0: i32, %arg1: i32) -> (i32, i32) {
    %c0_i32 = arith.constant 0 : i32
    return %arg1, %arg0 : i32, i32
  }
  func.func @transform_2(%arg0: i32, %arg1: i32) -> (i32, i32) {
    %c0_i32 = arith.constant 0 : i32
    %c0_i32_0 = arith.constant 0 : i32
    return %c0_i32, %arg0 : i32, i32
  }
  func.func @transform_3(%arg0: i32, %arg1: i32) -> (i32, i32) {
    %c0_i32 = arith.constant 0 : i32
    %c0_i32_0 = arith.constant 0 : i32
    return %c0_i32, %arg0 : i32, i32
  }
}

</mosaic_0001>

<bundles_post_ra>
// kernel: tpu_custom_call.1
= control target key start
LH: loop header
LB: loop body
LE: loop exit
PB: predicated region body
PF: predicated region fallthrough
CT: control target
= control target key end

     0   :  { %s1355_s0 = inlined_call_operand.hbm [shape: f32[8,256], index: 0, kind: input, shape index: {}]   ;;  %s1356_s1 = inlined_call_operand.hbm [shape: f32[256,256], index: 1, kind: input, shape index: {}]   ;;  %s1357_s2 = inlined_call_operand.vmem [shape: f32[1,256], index: 2, kind: input, shape index: {}]   ;;  %s1358_s3 = inlined_call_operand.hbm [shape: f32[8,256], index: 3, kind: output, shape index: {}]  }
   0x1   :  { %1366 = sst [smem:[#allocation19_spill]] %s1355_s0 }
   0x2   :  { %8 = vsyncpa [#allocation4], 0 }
   0x3   :  { %10 = vsyncpa [#allocation4 + $0x1], 0 }
   0x4   :  { %11 = vsyncpa [#allocation7], 0 }
   0x5   :  { %13 = vsyncpa [#allocation7 + $0x1], 0 }
   0x6   :  { %14 = vsyncpa [#allocation5], 0 }
   0x7   :  { %16 = vsyncpa [#allocation5 + $0x1], 0  ;;  %s976_s12 = smov 0   ;;  %s978_s13 = smov 0  }
   0x8   :  { %s980_s14 = smov 0   ;;  %s982_s15 = smov 0  }
   0x9   :  { %s984_s16 = smov 0   ;;  %s986_s17 = smov 0  }
   0xa   :  { %s988_s18 = smov 0   ;;  %s990_s19 = smov 0  }
   0xb   :  { %s992_s20 = smov 0   ;;  %s994_s21 = smov 0  }
   0xc   :  { %s996_s22 = smov 0   ;;  %s998_s23 = smov 0  }
   0xd   :  { %s1000_s24 = smov 0   ;;  %s1002_s25 = smov 0  }
   0xe LB: > { %1367 = sst [smem:[#allocation12_spill]] %s924_s20  ;;  %s496_s26 = sadd.s32 4294967295, %s944_s25   ;;  %s944_s25 = sphi %s1002_s25, %s22_s25   ;;  %s940_s24 = sphi %s1000_s24, %s1399_s24   ;;  %s936_s23 = sphi %s998_s23, %s1411_s23   ;;  %s932_s22 = sphi %s996_s22, %s1397_s22   ;;  %s928_s21 = sphi %s994_s21, %s1410_s21   ;;  %s924_s20 = sphi %s992_s20, %s1409_s20   ;;  %s920_s19 = sphi %s990_s19, %s1408_s19   ;;  %s916_s18 = sphi %s988_s18, %s1407_s18   ;;  %s912_s17 = sphi %s986_s17, %s1406_s17   ;;  %s908_s16 = sphi %s984_s16, %s1405_s16   ;;  %s904_s15 = sphi %s982_s15, %s1404_s15   ;;  %s900_s14 = sphi %s980_s14, %s1403_s14   ;;  %s896_s13 = sphi %s978_s13, %s1402_s13   ;;  %s892_s12 = sphi %s976_s12, %s1401_s12  }
   0xf   : > { %1368 = sst [smem:[#allocation13_spill]] %s940_s24  ;;  %s31_s28 = sadd.s32 1, %s936_s23 }
  0x10   : > { %s34_s29 = sadd.s32 1, %s940_s24  ;;  %p32_p0 = scmp.ge.s32.totalorder %s31_s28, 2 }
  0x11   : > { %s41_s30 = sadd.s32 1, %s924_s20  ;;  %p48_p1 = scmp.ne.s32.totalorder %s924_s20, %s920_s19 }
  0x12   : > { %p49_p2 = scmp.eq.s32.totalorder %s944_s25, 0  ;;  %s1413_s28 = smov (%p32_p0, %s31_s28), 0 }
  0x13   : > { %1369 = sst [smem:[#allocation14_spill]] %s1413_s28  ;;  %s1415_s29 = smov (!%p32_p0, %s34_s29), %s940_s24 }
  0x14   : > { %s38_s4 = ssub.s32 %s936_s23, %s1413_s28  ;;  %p1059_p3 = por %p49_p2, %p48_p1 }
  0x15   : > { %p36_p4 = scmp.ge.s32.totalorder %s1415_s29, 2  ;;  %p39_p5 = scmp.eq.s32.totalorder %s38_s4, 0 }
  0x16   : > { %p54_p6 = scmp.ne.s32.totalorder %s920_s19, %s916_s18  ;;  %p1066_p7 = scmp.eq.s32.totalorder %s496_s26, 0 }
  0x17   : > { %s1417_s29 = smov (%p36_p4, %s1415_s29), 0  ;;  %s69_s11 = sadd.s32 1, %s912_s17 }
  0x18   : > { %1372 = sst [smem:[#allocation15_spill]] %s1417_s29  ;;  %p1077_p8 = por %p1066_p7, %p54_p6 }
  0x19   : > { %s1073_s7 = scalar_select %p39_p5, %s924_s20, %s41_s30  }
  0x1a   : > { %s1374_s8 = scalar_select %p1077_p8, 1, 0 }
  0x1b   : > { %1373 = sst [smem:[#allocation16_spill]] %s1073_s7  ;;  %s65_s9 = ssub.s32 %s940_s24, %s1417_s29 }
  0x1c   : > { %s66_s10 = sor.u32 %s65_s9, %s38_s4  ;;  %p76_p10 = scmp.ne.s32.totalorder %s912_s17, %s908_s16 }
  0x1d   : > { %p67_p9 = scmp.eq.s32.totalorder %s66_s10, 0  ;;  %p82_p11 = scmp.ne.s32.totalorder %s908_s16, %s904_s15 }
  0x1e   : > { %p119_p12 = scmp.eq.s32.totalorder %s65_s9, 0  ;;  %p1093_p13 = por %p76_p10, %p49_p2 }
  0x1f   : > { %s1089_s18 = scalar_select %p67_p9, %s912_s17, %s69_s11  }
  0x20   : > { %p1099_p0 = por %p82_p11, %p1066_p7  ;;  %s121_s4 = sadd.s32 1, %s900_s14 }
  0x21   : > { %1375 = sst [smem:[#allocation17_spill]] %s1089_s18  ;;  %p131_p1 = scmp.ne.s32.totalorder %s900_s14, %s896_s13 }
  0x22   : > { %s1377_s27 = scalar_select %p1099_p0, 1, 0 }
  0x23   : > { %s1107_s10 = scalar_select %p119_p12, %s900_s14, %s121_s4  }
  0x24   : > { %p132_p4 = scmp.eq.s32.totalorder %s496_s26, 3  ;;  %p137_p5 = scmp.ne.s32.totalorder %s896_s13, %s892_s12 }
  0x25   : > { %1378 = sst [smem:[#allocation18_spill]] %s1107_s10  ;;  %s1379_s15 = sadd.s32 4294967294, %s944_s25  }
  0x26   : > { %p138_p2 = scmp.eq.s32.totalorder %s1379_s15, 3  ;;  %p1115_p6 = por %p132_p4, %p131_p1 }
  0x27   : > { %p611_p7 = scmp.lt.s32.totalorder %s944_s25, 4  ;;  %s158_s11 = sand.u32 1, %s924_s20  }
  0x28   : > { %s1380_s9 = scalar_select %p1115_p6, 1, 0 }
  0x29   : > { %p1120_p9 = por %p138_p2, %p137_p5  ;;  %s500_s29 = sshll.u32 %s158_s11, 3 }
  0x2a   : > { %s501_s4 = sshll.u32 %s936_s23, 7  ;;  %s1382_s0 = sld [smem:[#allocation19_spill]] }
  0x2b   : > { %s1381_s6 = scalar_select %p1120_p9, 1, 0 }
  0x2c   : > { %s162_s15 = scalar_lea.vmem [#allocation3], %s500_s29  ;;  %p1135_p10 = pnand %p611_p7, %p1059_p3 }
  0x2d   : > { %s169_s18 = sshll.u32 %s162_s15, 4  ;;  %p1142_p11 = pnand %p611_p7, %p1093_p13  ;;  %s1131_s18 = int_to_ptr.vmem [resolvable:$true] %s169_s18 }
  0x2e   : > { %s159_s7 = scalar_lea.sflag [#allocation4], %s158_s11  ;;  %p736_p4 = pneg %p1135_p10 }
  0x30   : > { %s1129_s26 = scalar_lea.hbm %s1382_s0, %s501_s4  ;;  %s739_s15 = scalar_lea.hbm %s1382_s0, 256 }
  0x31   : > { %s734_s29 = scalar_lea.hbm %s1129_s26, 128  ;;  %p740_p13 = scmp.lt.u32.totalorder %s1129_s26, %s1382_s0 }
  0x32   : > { %p735_p1 = scmp.ne.s32.totalorder %s1129_s26, %s734_s29  ;;  %p741_p2 = scmp.lt.u32.totalorder %s739_s15, %s734_s29 }
  0x33   : > { %p743_p12 = scmp.lt.u32.totalorder %s734_s29, %s1129_s26 }
  0x34   : > { %p737_p3 = pnand %p736_p4, %p735_p1  ;;  %p742_p7 = por %p741_p2, %p740_p13 }
  0x36   : > { %p738_p5 = pneg %p737_p3  ;;  %p744_p9 = por %p743_p12, %p742_p7 }
  0x38   : > { %p745_p6 = pnand %p744_p9, %p738_p5 }
  0x3a   : > { %748 = shalt.err (!%p745_p6)
}
  0x3b   : > { %s749_s11 = scalar_lea.vmem %s1131_s18, 128  ;;  %s946_s5 = smov [#allocation3]  }
  0x3c   : > { %p750_p1 = scmp.ne.s32.totalorder %s1131_s18, %s749_s11  ;;  %s754_s4 = sshll.u32 %s946_s5, 4  ;;  %s755_s4 = int_to_ptr.vmem [resolvable:$false] %s754_s4 }
  0x3d   : > { %s756_s20 = scalar_lea.vmem %s755_s4, 256  ;;  %p757_p8 = scmp.lt.s32.totalorder %s1131_s18, %s755_s4 }
  0x3e   : > { %p752_p3 = pnand %p750_p1, %p736_p4  ;;  %p758_p13 = scmp.lt.s32.totalorder %s756_s20, %s749_s11 }
  0x40   : > { %p753_p0 = pneg %p752_p3  ;;  %p759_p2 = por %p758_p13, %p757_p8 }
  0x42   : > { %p760_p12 = pnand %p759_p2, %p753_p0 }
  0x44   : > { %763 = shalt.err (!%p760_p12)
}
  0x45   : > { %603 = dma.hbm_to_vmem [thread:$0]  (!%p1135_p10), %s1129_s26, 128, %s1131_s18, %s159_s7  }
  0x46   : > { %p203_p6 = scmp.lt.s32.totalorder %s944_s25, 5  ;;  %s176_s29 = sand.u32 1, %s912_s17  }
  0x47   : > { %s1385_s15 = sshll.u32 %s936_s23, 5  ;;  %p1386_p9 = scmp.ge.s32.totalorder %s944_s25, 1 }
  0x48   : > { %s186_s30 = sadd.s32 %s940_s24, %s1385_s15  ;;  %s502_s10 = sshll.u32 %s176_s29, 7 }
  0x49   : > { %p1179_p8 = pnand %p1386_p9, %p203_p6  ;;  %s505_s5 = sshll.u32 %s186_s30, 7 }
  0x4a   : > { %s1186_s0 = scalar_lea.hbm %s1356_s1, %s505_s5  ;;  %s180_s18 = scalar_lea.vmem [#allocation6], %s502_s10 }
  0x4b   : > { %s189_s26 = sshll.u32 %s180_s18, 4  ;;  %s1190_s7 = scalar_lea.sflag [#allocation7], %s176_s29  ;;  %s1188_s26 = int_to_ptr.vmem [resolvable:$true] %s189_s26 }
  0x4c   : > { %s764_s15 = scalar_lea.hbm %s1186_s0, 2048  ;;  %p766_p10 = pneg %p1142_p11 }
  0x4d   : > { %p765_p0 = scmp.ne.s32.totalorder %s1186_s0, %s764_s15  ;;  %s769_s4 = scalar_lea.hbm %s1356_s1, 8192 }
  0x4e   : > { %p770_p7 = scmp.lt.u32.totalorder %s1186_s0, %s1356_s1  ;;  %p771_p1 = scmp.lt.u32.totalorder %s769_s4, %s764_s15 }
  0x4f   : > { %p767_p4 = pnand %p766_p10, %p765_p0  ;;  %p773_p13 = scmp.lt.u32.totalorder %s764_s15, %s1186_s0 }
  0x50   : > { %p772_p3 = por %p771_p1, %p770_p7 }
  0x51   : > { %p768_p5 = pneg %p767_p4 }
  0x52   : > { %p774_p2 = por %p773_p13, %p772_p3 }
  0x54   : > { %p775_p12 = pnand %p774_p2, %p768_p5 }
  0x56   : > { %778 = shalt.err (!%p775_p12)
}
  0x57   : > { %s779_s29 = scalar_lea.vmem %s1188_s26, 2048  ;;  %s947_s10 = smov [#allocation6]  }
  0x58   : > { %p780_p6 = scmp.ne.s32.totalorder %s1188_s26, %s779_s29  ;;  %s784_s18 = sshll.u32 %s947_s10, 4  ;;  %s785_s18 = int_to_ptr.vmem [resolvable:$false] %s784_s18 }
  0x59   : > { %s786_s24 = scalar_lea.vmem %s785_s18, 4096  ;;  %p787_p4 = scmp.lt.s32.totalorder %s1188_s26, %s785_s18 }
  0x5a   : > { %p782_p9 = pnand %p780_p6, %p766_p10  ;;  %p788_p7 = scmp.lt.s32.totalorder %s786_s24, %s779_s29 }
  0x5c   : > { %p783_p0 = pneg %p782_p9  ;;  %p789_p1 = por %p788_p7, %p787_p4 }
  0x5e   : > { %p790_p3 = pnand %p789_p1, %p783_p0 }
  0x60   : > { %793 = shalt.err (!%p790_p3)
}
  0x61   : > { %s948_s15 = smov 256   ;;  %s949_s30 = smov 128  }
  0x62   : > { %s950_s5 = smov 8   ;;  %207 = sbr.rel (%p1179_p8) target bundleno = 415 (0x19f), region = 32 }
  0x63   : > { %606 = dma.hbm_to_vmem [thread:$0]  (!%p1142_p11), %s1186_s0, 2048, %s1188_s26, %s1190_s7, %s948_s15, %s949_s30, %s950_s5  }
  0x64   : > { %s209_s4 = sand.u32 (!%p1179_p8), 1, %s920_s19   ;;  %p1388_p10 = scmp.ne.s32.totalorder (!%p1179_p8), %s1374_s8, 0 }
  0x65   : > { %s1221_s20 = sshll.u32 (!%p1179_p8), %s209_s4, 3  ;;  %s210_s29 = scalar_lea.sflag (!%p1179_p8), [#allocation4], %s209_s4 }
  0x66   : > { %s213_s10 = scalar_lea.vmem (!%p1179_p8), [#allocation3], %s1221_s20 }
  0x69   : > { %879 = dma.done.wait (%p1388_p10), %s210_s29, 128  }
  0x6a   : > { %881 = vsyncadd (%p1388_p10), %s210_s29, 4294967168  ;;  %s218_s28 = sand.u32 1, %s908_s16   ;;  %p1389_p11 = scmp.ne.s32.totalorder %s1377_s27, 0 }
  0x6b   : > { %s508_s0 = sshll.u32 %s218_s28, 7  ;;  %s219_s26 = scalar_lea.sflag [#allocation7], %s218_s28 }
  0x6c   : > { %s1229_s11 = scalar_lea.vmem [#allocation6], %s508_s0 }
  0x6d   : > { %883 = dma.done.wait (%p1389_p11), %s219_s26, 2048  }
  0x6e   : > { %885 = vsyncadd (%p1389_p11), %s219_s26, 4294965248  ;;  %s250_s7 = sand.u32 1, %s896_s13   ;;  %p254_p8 = scmp.lt.s32.totalorder %s932_s22, 1 }
  0x6f   : > { %s1239_s8 = sshll.u32 %s250_s7, 3  ;;  %p510_p5 = scmp.ne.s32.totalorder %s928_s21, 0 }
  0x70   : > { %s1242_s18 = scalar_select %p254_p8, %s932_s22, 1 }
  0x71   : > { %s252_s5 = scalar_lea.vmem [#allocation8], %s1239_s8  ;;  %260 = sbr.rel (%p510_p5) target bundleno = 120 (0x78), region = 44  ;;  %v951_v0 = vmov (!%p510_p5), 0.0  }
  0x72   : > { %s256_s30 = scalar_lea.vmem %s1357_s2, %s1242_s18  ;;  %261 = vst [vmem:[#allocation2] sm:$0xff] (!%p510_p5), %v951_v0 }
  0x78 PF: > { %v264_v1 = vld [vmem:[%s1229_s11] sm:$0xff]  ;;  %v265_v2 = vld [vmem:[%s1229_s11 + $0x8] sm:$0xff]  ;;  %v266_v3 = vld [vmem:[%s1229_s11 + $0x10] sm:$0xff]  ;;  %v952_v4 = vmov 0.0|0.0   ;;  %vm953_vm0 = vmmov 0   ;;  %v954_v7 = vmov 0.0  }
  0x79   : > { %570 = vmatprep.subr.bf16.mxu0 %v952_v4  ;;  %v571_v5 = vpack.c.bf16 %v265_v2, %v264_v1  ;;  %v267_v6 = vld [vmem:[%s1229_s11 + $0x18] sm:$0xff]  ;;  %567 = vmatprep.mubr.msk.f32.mxu0 %vm953_vm0, %v954_v7  ;;  %v268_v9 = vld [vmem:[%s1229_s11 + $0x20] sm:$0xff]  ;;  %v269_v10 = vld [vmem:[%s1229_s11 + $0x28] sm:$0xff]  ;;  %p511_p13 = scmp.ne.s32.totalorder %s928_s21, 1 }
  0x7a   : > { %v574_v8 = vpack.c.bf16 %v267_v6, %v266_v3  ;;  %v577_v11 = vpack.c.bf16 %v269_v10, %v268_v9  ;;  %v270_v12 = vld [vmem:[%s1229_s11 + $0x30] sm:$0xff]  ;;  %v271_v13 = vld [vmem:[%s1229_s11 + $0x38] sm:$0xff]  ;;  %v272_v15 = vld [vmem:[%s1229_s11 + $0x40] sm:$0xff] }
  0x7b   : > { %572 = vmatpush3.bf16.msra.mxu0 %v571_v5  ;;  %v580_v14 = vpack.c.bf16 %v271_v13, %v270_v12  ;;  %v273_v16 = vld [vmem:[%s1229_s11 + $0x48] sm:$0xff]  ;;  %v274_v18 = vld [vmem:[%s1229_s11 + $0x50] sm:$0xff]  ;;  %v275_v19 = vld [vmem:[%s1229_s11 + $0x58] sm:$0xff] }
  0x7c   : > { %573 = vmatprep.subr.bf16.mxu0 %v952_v4  ;;  %v583_v17 = vpack.c.bf16 %v273_v16, %v272_v15  ;;  %v586_v20 = vpack.c.bf16 %v275_v19, %v274_v18  ;;  %v276_v21 = vld [vmem:[%s1229_s11 + $0x60] sm:$0xff]  ;;  %v277_v22 = vld [vmem:[%s1229_s11 + $0x68] sm:$0xff]  ;;  %v278_v24 = vld [vmem:[%s1229_s11 + $0x70] sm:$0xff] }
  0x7d   : > { %v589_v23 = vpack.c.bf16 %v277_v22, %v276_v21  ;;  %v279_v25 = vld [vmem:[%s1229_s11 + $0x78] sm:$0xff]  ;;  %v262_v28 = vld [vmem:[#allocation2] sm:$0xff] }
  0x7e   : > { %v592_v26 = vpack.c.bf16 %v279_v25, %v278_v24  ;;  %v263_v27 = vld [vmem:[%s213_s10] sm:$0xff]  ;;  %v512_v33 = vld [vmem:[%s256_s30] ss:$0 sm:$0xff] (!%p511_p13) }
  0x7f   : > { %575 = vmatpush3.bf16.msra.mxu0 %v574_v8 }
  0x80   : > { %576 = vmatprep.subr.bf16.mxu0 %v952_v4 }
  0x83   : > { %578 = vmatpush3.bf16.msra.mxu0 %v577_v11 }
  0x84   : > { %579 = vmatprep.subr.bf16.mxu0 %v952_v4 }
  0x87   : > { %581 = vmatpush3.bf16.msra.mxu0 %v580_v14 }
  0x88   : > { %582 = vmatprep.subr.bf16.mxu0 %v952_v4 }
  0x8b   : > { %584 = vmatpush3.bf16.msra.mxu0 %v583_v17 }
  0x8c   : > { %585 = vmatprep.subr.bf16.mxu0 %v952_v4 }
  0x8f   : > { %587 = vmatpush3.bf16.msra.mxu0 %v586_v20 }
  0x90   : > { %588 = vmatprep.subr.bf16.mxu0 %v952_v4 }
  0x93   : > { %590 = vmatpush3.bf16.msra.mxu0 %v589_v23 }
  0x94   : > { %591 = vmatprep.subr.bf16.mxu0 %v952_v4 }
  0x97   : > { %593 = vmatpush3.bf16.msra.mxu0 %v592_v26 }
  0x9a   : > { %568 = vmatmul.mubr.f32.vlgmr.msra.gmra.mrb[0].mxu0 %v263_v27 }
 0x16a   : > { %355 = sbr.rel (%p511_p13) target bundleno = 390 (0x186), region = 48 }
 0x16d   : > { %v346_v29 = vpop.f32.mrb[0].mxu0 }
 0x16e   : > { %v350_v30 = vadd.f32 %v346_v29, %v262_v28  ;;  %v569_v31 = vpop.f32.mrb[1].mxu0 }
 0x170   : > { %351 = vst [vmem:[#allocation2] sm:$0xff] %v350_v30 }
 0x177   : > { %v356_v32 = vld [vmem:[#allocation2] sm:$0xff] }
 0x178   : > { %v364_v34 = vadd.f32 %v512_v33, %v356_v32 }
 0x17a   : > { %732 = vtanh.f32 %v364_v34 }
 0x184   : > { %v733_v35 = vpop.eup %732 }
 0x185   : > { %366 = vst [vmem:[%s252_s5] sm:$0xff] %v733_v35 }
 0x186 PF: > { %s514_s21 = sshll.u32 %s932_s22, 7  ;;  %s381_s28 = sshll.u32 %s252_s5, 4  ;;  %s382_s28 = int_to_ptr.vmem [resolvable:$true] %s381_s28 }
 0x187   : > { %s1280_s10 = scalar_lea.hbm %s1358_s3, %s514_s21  ;;  %s368_s0 = scalar_lea.sflag [#allocation5], %s250_s7 }
 0x188   : > { %s794_s26 = scalar_lea.vmem %s382_s28, 128  ;;  %p1390_p12 = scmp.ne.s32.totalorder %s1380_s9, 0 }
 0x189   : > { %p795_p2 = scmp.ne.s32.totalorder %s382_s28, %s794_s26  ;;  %s955_s11 = smov [#allocation8]  }
 0x18a   : > { %s798_s18 = sshll.u32 %s955_s11, 4  ;;  %s799_s18 = int_to_ptr.vmem [resolvable:$false] %s798_s18 }
 0x18b   : > { %p796_p6 = pnand %p795_p2, %p1390_p12  ;;  %s800_s24 = scalar_lea.vmem %s799_s18, 256 }
 0x18c   : > { %p801_p0 = scmp.lt.s32.totalorder %s382_s28, %s799_s18  ;;  %p802_p4 = scmp.lt.s32.totalorder %s800_s24, %s794_s26 }
 0x18d   : > { %p797_p9 = pneg %p796_p6 }
 0x18e   : > { %p803_p7 = por %p802_p4, %p801_p0 }
 0x190   : > { %p804_p1 = pnand %p803_p7, %p797_p9 }
 0x192   : > { %807 = shalt.err (!%p804_p1)
}
 0x193   : > { %s808_s22 = scalar_lea.hbm %s1280_s10, 128  ;;  %s812_s15 = scalar_lea.hbm %s1358_s3, 256 }
 0x194   : > { %p809_p3 = scmp.ne.s32.totalorder %s1280_s10, %s808_s22  ;;  %p813_p8 = scmp.lt.u32.totalorder %s1280_s10, %s1358_s3 }
 0x195   : > { %p814_p5 = scmp.lt.u32.totalorder %s812_s15, %s808_s22  ;;  %p816_p2 = scmp.lt.u32.totalorder %s808_s22, %s1280_s10 }
 0x196   : > { %p810_p10 = pnand %p809_p3, %p1390_p12 }
 0x197   : > { %p815_p13 = por %p814_p5, %p813_p8 }
 0x198   : > { %p811_p11 = pneg %p810_p10 }
 0x199   : > { %p817_p6 = por %p816_p2, %p815_p13 }
 0x19b   : > { %p818_p9 = pnand %p817_p6, %p811_p11 }
 0x19d   : > { %821 = shalt.err (!%p818_p9)
}
 0x19e   : > { %598 = dma.vmem_to_hbm [thread:$0]  (%p1390_p12), %s382_s28, 128, %s1280_s10, %s368_s0  }
 0x19f PF: > { %p612_p0 = scmp.ge.s32.totalorder %s944_s25, 2  ;;  %s393_s27 = sand.u32 1, %s892_s12  }
 0x1a0   : > { %p1391_p4 = scmp.ne.s32.totalorder %s1381_s6, 0  ;;  %s394_s4 = scalar_lea.sflag [#allocation5], %s393_s27 }
 0x1a2   : > { %p608_p7 = pnand %p612_p0, %p1391_p4 }
 0x1a4   : > { %887 = dma.done.wait (!%p608_p7), %s394_s4, 128  }
 0x1a5   : > { %889 = vsyncadd (!%p608_p7), %s394_s4, 4294967168  ;;  %s22_s25 = sadd.s32 1, %s944_s25   ;;  %s1393_s9 = sld [smem:[#allocation18_spill]] }
 0x1a6   : > { %p1308_p1 = scmp.ge.s32.totalorder %s22_s25, 6   ;;  %s1394_s20 = sld [smem:[#allocation17_spill]] }
 0x1a7   : > { %s1395_s29 = sld [smem:[#allocation12_spill]]  ;;  %s1396_s10 = sld [smem:[#allocation16_spill]] }
 0x1a8   : > { %s1397_s22 = sld [smem:[#allocation13_spill]]  ;;  %s1398_s6 = sld [smem:[#allocation14_spill]] }
 0x1a9   : > { %s1399_s24 = sld [smem:[#allocation15_spill]]  ;;  %s1401_s12 = smov %s896_s13 }
 0x1aa   : > { %s1402_s13 = smov %s900_s14  ;;  %s1404_s15 = smov %s908_s16 }
 0x1ab   : > { %s1403_s14 = smov %s1393_s9  ;;  %s1405_s16 = smov %s912_s17 }
 0x1ac   : > { %s1406_s17 = smov %s1394_s20  ;;  %s1407_s18 = smov %s920_s19 }
 0x1ad   : > { %s1408_s19 = smov %s1395_s29  ;;  %s1409_s20 = smov %s1396_s10 }
 0x1ae   : > { %s1410_s21 = smov %s936_s23  ;;  %s1411_s23 = smov %s1398_s6 }
 0x1af   :  { %21 = sbr.rel (!%p1308_p1) target bundleno = 14 (0xe), region = 101 }
 0x1b6   :  { %399 = vsyncpa [#allocation4], 1 }
 0x1b7   :  { %401 = vsyncpa [#allocation4 + $0x1], 1 }
 0x1b8   :  { %402 = vsyncpa [#allocation7], 1 }
 0x1b9   :  { %404 = vsyncpa [#allocation7 + $0x1], 1 }
 0x1ba   :  { %405 = vsyncpa [#allocation5], 1 }
 0x1bb   :  { %407 = vsyncpa [#allocation5 + $0x1], 1 }

</bundles_post_ra>
